<compile_context>
chip_gen: v6e
topology: v6e:2x2x1
jax: 0.10.0
libtpu: 0.0.40
codegen_flags: <defaults>
</compile_context>

<pallas_src>
import jax
import jax.numpy as jnp
from jax.experimental import pallas as pl
from jax.experimental.pallas import tpu as pltpu

EPS = 1e-12          # matches torch.nn.functional.normalize default eps
NUM_CORES = 2        # leading "parallel" grid axis (megacore split on v7x)


def _nvl_kernel(p_ref, out_ref, acc_ref):
    # p_ref:   (18, tile_rows, 128)  packed component planes
    #          rows 0..8  = coord_out vertices {0,1,2} x components {x,y,z}
    #          rows 9..17 = coord_gt  vertices {0,1,2} x components {x,y,z}
    # out_ref: (1, 8, 128)           per-core partial sums (lane-dense)
    # acc_ref: (tile_rows, 128)      full-vreg f32 accumulator (scratch)
    i = pl.program_id(1)

    @pl.when(i == 0)
    def _():
        acc_ref[...] = jnp.zeros_like(acc_ref)

    def vert(base, v):
        k = base + 3 * v
        return (p_ref[k + 0], p_ref[k + 1], p_ref[k + 2])

    def sub(a, b):
        return (a[0] - b[0], a[1] - b[1], a[2] - b[2])

    def normalize(v):
        s = v[0] * v[0] + v[1] * v[1] + v[2] * v[2]
        inv = jax.lax.rsqrt(jnp.maximum(s, EPS * EPS))  # == 1 / max(|v|, EPS)
        return (v[0] * inv, v[1] * inv, v[2] * inv)

    def cross(a, b):
        return (a[1] * b[2] - a[2] * b[1],
                a[2] * b[0] - a[0] * b[2],
                a[0] * b[1] - a[1] * b[0])

    def abs_dot(a, b):
        return jnp.abs(a[0] * b[0] + a[1] * b[1] + a[2] * b[2])

    p0o, p1o, p2o = vert(0, 0), vert(0, 1), vert(0, 2)
    p0g, p1g, p2g = vert(9, 0), vert(9, 1), vert(9, 2)

    v1o = normalize(sub(p1o, p0o))
    v2o = normalize(sub(p2o, p0o))
    v3o = normalize(sub(p2o, p1o))
    v1g = normalize(sub(p1g, p0g))
    v2g = normalize(sub(p2g, p0g))
    n_gt = normalize(cross(v1g, v2g))

    acc_ref[...] += abs_dot(v1o, n_gt) + abs_dot(v2o, n_gt) + abs_dot(v3o, n_gt)

    @pl.when(i == pl.num_programs(1) - 1)
    def _():
        tr = acc_ref.shape[0]
        folded = acc_ref[...].reshape(tr // 8, 8, 128).sum(axis=0)  # (8,128)
        out_ref[0] = folded


def normal_vector_loss(coord_out, coord_gt, face, tile_rows=32):
    """coord_out, coord_gt: (B, V, 3) float; face: (F, 3) int -> scalar loss."""
    assert tile_rows % 8 == 0
    B, _, _ = coord_out.shape
    n_faces = face.shape[0]
    n_elems = B * n_faces

    def planes(coord):
        # Single gather per coord tensor: (B, F, 3verts, 3xyz)
        g = coord[:, face, :]
        # -> (3verts, 3xyz, B, F) -> 9 lane-dense planes of length B*F
        g = jnp.transpose(g, (2, 3, 0, 1))
        return g.reshape(9, n_elems).astype(jnp.float32)

    packed = jnp.concatenate([planes(coord_out), planes(coord_gt)], axis=0)  # (18, B*F)

    # Pad faces axis with zeros; zero-length edges normalize to 0 (eps clamp)
    # so padded slots contribute exactly 0 to the sum.
    chunk = NUM_CORES * tile_rows * 128
    n_pad = pl.cdiv(n_elems, chunk) * chunk
    if n_pad != n_elems:
        packed = jnp.pad(packed, ((0, 0), (0, n_pad - n_elems)))
    n_rows = n_pad // 128
    packed = packed.reshape(18, n_rows, 128)

    n_tiles = n_rows // (NUM_CORES * tile_rows)   # inner grid steps per core

    in_spec = pl.BlockSpec((18, tile_rows, 128),
                           lambda c, i: (0, c * n_tiles + i, 0))
    out_spec = pl.BlockSpec((1, 8, 128), lambda c, i: (c, 0, 0))

    partials = pl.pallas_call(
        _nvl_kernel,
        out_shape=jax.ShapeDtypeStruct((NUM_CORES, 8, 128), jnp.float32),
        grid_spec=pltpu.PrefetchScalarGridSpec(
            num_scalar_prefetch=0,
            grid=(NUM_CORES, n_tiles),
            in_specs=[in_spec],
            out_specs=out_spec,
            scratch_shapes=[pltpu.VMEM((tile_rows, 128), jnp.float32)],
        ),
        compiler_params=pltpu.CompilerParams(
            dimension_semantics=("parallel", "arbitrary")),
    )(packed)

    # loss = cat((cos1, cos2, cos3), dim=1).mean()  ->  sum / (B * 3 * F)
    return jnp.sum(partials) / jnp.float32(B * 3 * n_faces)


def _reference(coord_out, coord_gt, face):
    def norm(v):
        n = jnp.maximum(jnp.linalg.norm(v, axis=2, keepdims=True), EPS)
        return v / n

    v1_out = norm(coord_out[:, face[:, 1], :] - coord_out[:, face[:, 0], :])
    v2_out = norm(coord_out[:, face[:, 2], :] - coord_out[:, face[:, 0], :])
    v3_out = norm(coord_out[:, face[:, 2], :] - coord_out[:, face[:, 1], :])
    v1_gt = norm(coord_gt[:, face[:, 1], :] - coord_gt[:, face[:, 0], :])
    v2_gt = norm(coord_gt[:, face[:, 2], :] - coord_gt[:, face[:, 0], :])
    normal_gt = norm(jnp.cross(v1_gt, v2_gt, axis=2))
    cos1 = jnp.abs(jnp.sum(v1_out * normal_gt, 2, keepdims=True))
    cos2 = jnp.abs(jnp.sum(v2_out * normal_gt, 2, keepdims=True))
    cos3 = jnp.abs(jnp.sum(v3_out * normal_gt, 2, keepdims=True))
    return jnp.concatenate((cos1, cos2, cos3), 1).mean()


if __name__ == "__main__":
    key = jax.random.PRNGKey(0)
    k1, k2, k3 = jax.random.split(key, 3)

    B, V, n_faces = 2, 32, 10
    coord_out = jax.random.normal(k1, (B, V, 3), dtype=jnp.float32)
    coord_gt = jax.random.normal(k2, (B, V, 3), dtype=jnp.float32)
    # deterministic synthetic mesh connectivity (stands in for self.face)
    face = jax.random.randint(k3, (n_faces, 3), 0, V, dtype=jnp.int32)

    loss = normal_vector_loss(coord_out, coord_gt, face)
    loss = jax.block_until_ready(loss)

    ref = _reference(coord_out, coord_gt, face)
    assert jnp.allclose(loss, ref, rtol=1e-5, atol=1e-5), (loss, ref)

    print("KERNEL_OK")
</pallas_src>

<mosaic_0001>
module attributes {stable_mosaic.version = 11 : i64} {
  func.func @_nvl_kernel(%arg0: i32, %arg1: i32, %arg2: memref<18x32x128xf32, #tpu.memory_space<vmem>>, %arg3: memref<1x8x128xf32, #tpu.memory_space<vmem>>, %arg4: memref<32x128xf32, #tpu.memory_space<vmem>>) attributes {dimension_semantics = [#tpu.dimension_semantics<parallel>, #tpu.dimension_semantics<arbitrary>], iteration_bounds = array<i64: 2, 1>, scalar_prefetch = 0 : i64, scratch_operands = 1 : i64, tpu.core_type = #tpu.core_type<tc>, window_params = [{transform_indices = @transform_0, window_bounds = array<i64: 18, 32, 128>}, {transform_indices = @transform_1, window_bounds = array<i64: 1, 8, 128>}]} {
    %c0_i32 = arith.constant 0 : i32
    %0 = arith.cmpi eq, %arg1, %c0_i32 : i32
    %1 = arith.extui %0 : i1 to i32
    %c0_i32_0 = arith.constant 0 : i32
    %2 = arith.cmpi ne, %1, %c0_i32_0 : i32
    scf.if %2 {
      %cst_48 = arith.constant 0.000000e+00 : f32
      %155 = vector.broadcast %cst_48 : f32 to vector<32x128xf32>
      %c0_49 = arith.constant 0 : index
      %c0_50 = arith.constant 0 : index
      %156 = vector.load %arg4[%c0_49, %c0_50] : memref<32x128xf32, #tpu.memory_space<vmem>>, vector<32x128xf32>
      tpu.vector_store %arg4[%c0_49, %c0_50], %155 {strides = array<i32>} : memref<32x128xf32, #tpu.memory_space<vmem>>, vector<32x128xf32>,
    } else {
    }
    %c0 = arith.constant 0 : index
    %c0_1 = arith.constant 0 : index
    %c0_2 = arith.constant 0 : index
    %3 = vector.load %arg2[%c0, %c0_1, %c0_2] : memref<18x32x128xf32, #tpu.memory_space<vmem>>, vector<1x32x128xf32>
    %4 = vector.shape_cast %3 : vector<1x32x128xf32> to vector<32x128xf32>
    %c1 = arith.constant 1 : index
    %c0_3 = arith.constant 0 : index
    %c0_4 = arith.constant 0 : index
    %5 = vector.load %arg2[%c1, %c0_3, %c0_4] : memref<18x32x128xf32, #tpu.memory_space<vmem>>, vector<1x32x128xf32>
    %6 = vector.shape_cast %5 : vector<1x32x128xf32> to vector<32x128xf32>
    %c2 = arith.constant 2 : index
    %c0_5 = arith.constant 0 : index
    %c0_6 = arith.constant 0 : index
    %7 = vector.load %arg2[%c2, %c0_5, %c0_6] : memref<18x32x128xf32, #tpu.memory_space<vmem>>, vector<1x32x128xf32>
    %8 = vector.shape_cast %7 : vector<1x32x128xf32> to vector<32x128xf32>
    %c3 = arith.constant 3 : index
    %c0_7 = arith.constant 0 : index
    %c0_8 = arith.constant 0 : index
    %9 = vector.load %arg2[%c3, %c0_7, %c0_8] : memref<18x32x128xf32, #tpu.memory_space<vmem>>, vector<1x32x128xf32>
    %10 = vector.shape_cast %9 : vector<1x32x128xf32> to vector<32x128xf32>
    %c4 = arith.constant 4 : index
    %c0_9 = arith.constant 0 : index
    %c0_10 = arith.constant 0 : index
    %11 = vector.load %arg2[%c4, %c0_9, %c0_10] : memref<18x32x128xf32, #tpu.memory_space<vmem>>, vector<1x32x128xf32>
    %12 = vector.shape_cast %11 : vector<1x32x128xf32> to vector<32x128xf32>
    %c5 = arith.constant 5 : index
    %c0_11 = arith.constant 0 : index
    %c0_12 = arith.constant 0 : index
    %13 = vector.load %arg2[%c5, %c0_11, %c0_12] : memref<18x32x128xf32, #tpu.memory_space<vmem>>, vector<1x32x128xf32>
    %14 = vector.shape_cast %13 : vector<1x32x128xf32> to vector<32x128xf32>
    %c6 = arith.constant 6 : index
    %c0_13 = arith.constant 0 : index
    %c0_14 = arith.constant 0 : index
    %15 = vector.load %arg2[%c6, %c0_13, %c0_14] : memref<18x32x128xf32, #tpu.memory_space<vmem>>, vector<1x32x128xf32>
    %16 = vector.shape_cast %15 : vector<1x32x128xf32> to vector<32x128xf32>
    %c7 = arith.constant 7 : index
    %c0_15 = arith.constant 0 : index
    %c0_16 = arith.constant 0 : index
    %17 = vector.load %arg2[%c7, %c0_15, %c0_16] : memref<18x32x128xf32, #tpu.memory_space<vmem>>, vector<1x32x128xf32>
    %18 = vector.shape_cast %17 : vector<1x32x128xf32> to vector<32x128xf32>
    %c8 = arith.constant 8 : index
    %c0_17 = arith.constant 0 : index
    %c0_18 = arith.constant 0 : index
    %19 = vector.load %arg2[%c8, %c0_17, %c0_18] : memref<18x32x128xf32, #tpu.memory_space<vmem>>, vector<1x32x128xf32>
    %20 = vector.shape_cast %19 : vector<1x32x128xf32> to vector<32x128xf32>
    %c9 = arith.constant 9 : index
    %c0_19 = arith.constant 0 : index
    %c0_20 = arith.constant 0 : index
    %21 = vector.load %arg2[%c9, %c0_19, %c0_20] : memref<18x32x128xf32, #tpu.memory_space<vmem>>, vector<1x32x128xf32>
    %22 = vector.shape_cast %21 : vector<1x32x128xf32> to vector<32x128xf32>
    %c10 = arith.constant 10 : index
    %c0_21 = arith.constant 0 : index
    %c0_22 = arith.constant 0 : index
    %23 = vector.load %arg2[%c10, %c0_21, %c0_22] : memref<18x32x128xf32, #tpu.memory_space<vmem>>, vector<1x32x128xf32>
    %24 = vector.shape_cast %23 : vector<1x32x128xf32> to vector<32x128xf32>
    %c11 = arith.constant 11 : index
    %c0_23 = arith.constant 0 : index
    %c0_24 = arith.constant 0 : index
    %25 = vector.load %arg2[%c11, %c0_23, %c0_24] : memref<18x32x128xf32, #tpu.memory_space<vmem>>, vector<1x32x128xf32>
    %26 = vector.shape_cast %25 : vector<1x32x128xf32> to vector<32x128xf32>
    %c12 = arith.constant 12 : index
    %c0_25 = arith.constant 0 : index
    %c0_26 = arith.constant 0 : index
    %27 = vector.load %arg2[%c12, %c0_25, %c0_26] : memref<18x32x128xf32, #tpu.memory_space<vmem>>, vector<1x32x128xf32>
    %28 = vector.shape_cast %27 : vector<1x32x128xf32> to vector<32x128xf32>
    %c13 = arith.constant 13 : index
    %c0_27 = arith.constant 0 : index
    %c0_28 = arith.constant 0 : index
    %29 = vector.load %arg2[%c13, %c0_27, %c0_28] : memref<18x32x128xf32, #tpu.memory_space<vmem>>, vector<1x32x128xf32>
    %30 = vector.shape_cast %29 : vector<1x32x128xf32> to vector<32x128xf32>
    %c14 = arith.constant 14 : index
    %c0_29 = arith.constant 0 : index
    %c0_30 = arith.constant 0 : index
    %31 = vector.load %arg2[%c14, %c0_29, %c0_30] : memref<18x32x128xf32, #tpu.memory_space<vmem>>, vector<1x32x128xf32>
    %32 = vector.shape_cast %31 : vector<1x32x128xf32> to vector<32x128xf32>
    %c15 = arith.constant 15 : index
    %c0_31 = arith.constant 0 : index
    %c0_32 = arith.constant 0 : index
    %33 = vector.load %arg2[%c15, %c0_31, %c0_32] : memref<18x32x128xf32, #tpu.memory_space<vmem>>, vector<1x32x128xf32>
    %34 = vector.shape_cast %33 : vector<1x32x128xf32> to vector<32x128xf32>
    %c16 = arith.constant 16 : index
    %c0_33 = arith.constant 0 : index
    %c0_34 = arith.constant 0 : index
    %35 = vector.load %arg2[%c16, %c0_33, %c0_34] : memref<18x32x128xf32, #tpu.memory_space<vmem>>, vector<1x32x128xf32>
    %36 = vector.shape_cast %35 : vector<1x32x128xf32> to vector<32x128xf32>
    %c17 = arith.constant 17 : index
    %c0_35 = arith.constant 0 : index
    %c0_36 = arith.constant 0 : index
    %37 = vector.load %arg2[%c17, %c0_35, %c0_36] : memref<18x32x128xf32, #tpu.memory_space<vmem>>, vector<1x32x128xf32>
    %38 = vector.shape_cast %37 : vector<1x32x128xf32> to vector<32x128xf32>
    %39 = arith.subf %10, %4 : vector<32x128xf32>
    %40 = arith.subf %12, %6 : vector<32x128xf32>
    %41 = arith.subf %14, %8 : vector<32x128xf32>
    %42 = arith.mulf %39, %39 : vector<32x128xf32>
    %43 = arith.mulf %40, %40 : vector<32x128xf32>
    %44 = arith.addf %42, %43 : vector<32x128xf32>
    %45 = arith.mulf %41, %41 : vector<32x128xf32>
    %46 = arith.addf %44, %45 : vector<32x128xf32>
    %cst = arith.constant 1.000000e-24 : f32
    %47 = vector.broadcast %cst : f32 to vector<32x128xf32>
    %48 = arith.maximumf %46, %47 : vector<32x128xf32>
    %49 = math.rsqrt %48 : vector<32x128xf32>
    %50 = arith.mulf %39, %49 : vector<32x128xf32>
    %51 = arith.mulf %40, %49 : vector<32x128xf32>
    %52 = arith.mulf %41, %49 : vector<32x128xf32>
    %53 = arith.subf %16, %4 : vector<32x128xf32>
    %54 = arith.subf %18, %6 : vector<32x128xf32>
    %55 = arith.subf %20, %8 : vector<32x128xf32>
    %56 = arith.mulf %53, %53 : vector<32x128xf32>
    %57 = arith.mulf %54, %54 : vector<32x128xf32>
    %58 = arith.addf %56, %57 : vector<32x128xf32>
    %59 = arith.mulf %55, %55 : vector<32x128xf32>
    %60 = arith.addf %58, %59 : vector<32x128xf32>
    %cst_37 = arith.constant 1.000000e-24 : f32
    %61 = vector.broadcast %cst_37 : f32 to vector<32x128xf32>
    %62 = arith.maximumf %60, %61 : vector<32x128xf32>
    %63 = math.rsqrt %62 : vector<32x128xf32>
    %64 = arith.mulf %53, %63 : vector<32x128xf32>
    %65 = arith.mulf %54, %63 : vector<32x128xf32>
    %66 = arith.mulf %55, %63 : vector<32x128xf32>
    %67 = arith.subf %16, %10 : vector<32x128xf32>
    %68 = arith.subf %18, %12 : vector<32x128xf32>
    %69 = arith.subf %20, %14 : vector<32x128xf32>
    %70 = arith.mulf %67, %67 : vector<32x128xf32>
    %71 = arith.mulf %68, %68 : vector<32x128xf32>
    %72 = arith.addf %70, %71 : vector<32x128xf32>
    %73 = arith.mulf %69, %69 : vector<32x128xf32>
    %74 = arith.addf %72, %73 : vector<32x128xf32>
    %cst_38 = arith.constant 1.000000e-24 : f32
    %75 = vector.broadcast %cst_38 : f32 to vector<32x128xf32>
    %76 = arith.maximumf %74, %75 : vector<32x128xf32>
    %77 = math.rsqrt %76 : vector<32x128xf32>
    %78 = arith.mulf %67, %77 : vector<32x128xf32>
    %79 = arith.mulf %68, %77 : vector<32x128xf32>
    %80 = arith.mulf %69, %77 : vector<32x128xf32>
    %81 = arith.subf %28, %22 : vector<32x128xf32>
    %82 = arith.subf %30, %24 : vector<32x128xf32>
    %83 = arith.subf %32, %26 : vector<32x128xf32>
    %84 = arith.mulf %81, %81 : vector<32x128xf32>
    %85 = arith.mulf %82, %82 : vector<32x128xf32>
    %86 = arith.addf %84, %85 : vector<32x128xf32>
    %87 = arith.mulf %83, %83 : vector<32x128xf32>
    %88 = arith.addf %86, %87 : vector<32x128xf32>
    %cst_39 = arith.constant 1.000000e-24 : f32
    %89 = vector.broadcast %cst_39 : f32 to vector<32x128xf32>
    %90 = arith.maximumf %88, %89 : vector<32x128xf32>
    %91 = math.rsqrt %90 : vector<32x128xf32>
    %92 = arith.mulf %81, %91 : vector<32x128xf32>
    %93 = arith.mulf %82, %91 : vector<32x128xf32>
    %94 = arith.mulf %83, %91 : vector<32x128xf32>
    %95 = arith.subf %34, %22 : vector<32x128xf32>
    %96 = arith.subf %36, %24 : vector<32x128xf32>
    %97 = arith.subf %38, %26 : vector<32x128xf32>
    %98 = arith.mulf %95, %95 : vector<32x128xf32>
    %99 = arith.mulf %96, %96 : vector<32x128xf32>
    %100 = arith.addf %98, %99 : vector<32x128xf32>
    %101 = arith.mulf %97, %97 : vector<32x128xf32>
    %102 = arith.addf %100, %101 : vector<32x128xf32>
    %cst_40 = arith.constant 1.000000e-24 : f32
    %103 = vector.broadcast %cst_40 : f32 to vector<32x128xf32>
    %104 = arith.maximumf %102, %103 : vector<32x128xf32>
    %105 = math.rsqrt %104 : vector<32x128xf32>
    %106 = arith.mulf %95, %105 : vector<32x128xf32>
    %107 = arith.mulf %96, %105 : vector<32x128xf32>
    %108 = arith.mulf %97, %105 : vector<32x128xf32>
    %109 = arith.mulf %93, %108 : vector<32x128xf32>
    %110 = arith.mulf %94, %107 : vector<32x128xf32>
    %111 = arith.subf %109, %110 : vector<32x128xf32>
    %112 = arith.mulf %94, %106 : vector<32x128xf32>
    %113 = arith.mulf %92, %108 : vector<32x128xf32>
    %114 = arith.subf %112, %113 : vector<32x128xf32>
    %115 = arith.mulf %92, %107 : vector<32x128xf32>
    %116 = arith.mulf %93, %106 : vector<32x128xf32>
    %117 = arith.subf %115, %116 : vector<32x128xf32>
    %118 = arith.mulf %111, %111 : vector<32x128xf32>
    %119 = arith.mulf %114, %114 : vector<32x128xf32>
    %120 = arith.addf %118, %119 : vector<32x128xf32>
    %121 = arith.mulf %117, %117 : vector<32x128xf32>
    %122 = arith.addf %120, %121 : vector<32x128xf32>
    %cst_41 = arith.constant 1.000000e-24 : f32
    %123 = vector.broadcast %cst_41 : f32 to vector<32x128xf32>
    %124 = arith.maximumf %122, %123 : vector<32x128xf32>
    %125 = math.rsqrt %124 : vector<32x128xf32>
    %126 = arith.mulf %111, %125 : vector<32x128xf32>
    %127 = arith.mulf %114, %125 : vector<32x128xf32>
    %128 = arith.mulf %117, %125 : vector<32x128xf32>
    %c0_42 = arith.constant 0 : index
    %c0_43 = arith.constant 0 : index
    %129 = vector.load %arg4[%c0_42, %c0_43] : memref<32x128xf32, #tpu.memory_space<vmem>>, vector<32x128xf32>
    %130 = arith.mulf %50, %126 : vector<32x128xf32>
    %131 = arith.mulf %51, %127 : vector<32x128xf32>
    %132 = arith.addf %130, %131 : vector<32x128xf32>
    %133 = arith.mulf %52, %128 : vector<32x128xf32>
    %134 = arith.addf %132, %133 : vector<32x128xf32>
    %135 = math.absf %134 : vector<32x128xf32>
    %136 = arith.mulf %64, %126 : vector<32x128xf32>
    %137 = arith.mulf %65, %127 : vector<32x128xf32>
    %138 = arith.addf %136, %137 : vector<32x128xf32>
    %139 = arith.mulf %66, %128 : vector<32x128xf32>
    %140 = arith.addf %138, %139 : vector<32x128xf32>
    %141 = math.absf %140 : vector<32x128xf32>
    %142 = arith.addf %135, %141 : vector<32x128xf32>
    %143 = arith.mulf %78, %126 : vector<32x128xf32>
    %144 = arith.mulf %79, %127 : vector<32x128xf32>
    %145 = arith.addf %143, %144 : vector<32x128xf32>
    %146 = arith.mulf %80, %128 : vector<32x128xf32>
    %147 = arith.addf %145, %146 : vector<32x128xf32>
    %148 = math.absf %147 : vector<32x128xf32>
    %149 = arith.addf %142, %148 : vector<32x128xf32>
    %150 = arith.addf %129, %149 : vector<32x128xf32>
    %c0_44 = arith.constant 0 : index
    %c0_45 = arith.constant 0 : index
    %151 = vector.load %arg4[%c0_44, %c0_45] : memref<32x128xf32, #tpu.memory_space<vmem>>, vector<32x128xf32>
    tpu.vector_store %arg4[%c0_44, %c0_45], %150 {strides = array<i32>} : memref<32x128xf32, #tpu.memory_space<vmem>>, vector<32x128xf32>,
    %c0_i32_46 = arith.constant 0 : i32
    %152 = arith.cmpi eq, %arg1, %c0_i32_46 : i32
    %153 = arith.extui %152 : i1 to i32
    %c0_i32_47 = arith.constant 0 : i32
    %154 = arith.cmpi ne, %153, %c0_i32_47 : i32
    scf.if %154 {
      %c0_48 = arith.constant 0 : index
      %c0_49 = arith.constant 0 : index
      %155 = vector.load %arg4[%c0_48, %c0_49] : memref<32x128xf32, #tpu.memory_space<vmem>>, vector<32x128xf32>
      %156 = vector.shape_cast %155 : vector<32x128xf32> to vector<4x8x128xf32>
      %cst_50 = arith.constant dense<0.000000e+00> : vector<8x128xf32>
      %157 = vector.multi_reduction <add>, %156, %cst_50 [0] : vector<4x8x128xf32> to vector<8x128xf32>
      %c0_51 = arith.constant 0 : index
      %c0_52 = arith.constant 0 : index
      %c0_53 = arith.constant 0 : index
      %158 = vector.load %arg3[%c0_51, %c0_52, %c0_53] : memref<1x8x128xf32, #tpu.memory_space<vmem>>, vector<1x8x128xf32>
      %159 = vector.shape_cast %158 : vector<1x8x128xf32> to vector<8x128xf32>
      %160 = vector.shape_cast %157 : vector<8x128xf32> to vector<1x8x128xf32>
      tpu.vector_store %arg3[%c0_51, %c0_52, %c0_53], %160 {strides = array<i32>} : memref<1x8x128xf32, #tpu.memory_space<vmem>>, vector<1x8x128xf32>,
    } else {
    }
    return
  }
  func.func @transform_0(%arg0: i32, %arg1: i32) -> (i32, i32, i32) {
    %c1_i32 = arith.constant 1 : i32
    %0 = arith.muli %arg0, %c1_i32 : i32
    %1 = arith.addi %0, %arg1 : i32
    %c0_i32 = arith.constant 0 : i32
    %c0_i32_0 = arith.constant 0 : i32
    %c0_i32_1 = arith.constant 0 : i32
    return %c0_i32, %1, %c0_i32_0 : i32, i32, i32
  }
  func.func @transform_1(%arg0: i32, %arg1: i32) -> (i32, i32, i32) {
    %c0_i32 = arith.constant 0 : i32
    %c0_i32_0 = arith.constant 0 : i32
    %c0_i32_1 = arith.constant 0 : i32
    return %arg0, %c0_i32, %c0_i32_0 : i32, i32, i32
  }
}

</mosaic_0001>

<bundles_post_ra>
// kernel: tpu_custom_call.1
= control target key start
LH: loop header
LB: loop body
LE: loop exit
PB: predicated region body
PF: predicated region fallthrough
CT: control target
= control target key end

     0   :  { %6 = vsyncpa [#allocation4], 0  ;;  %s2022_s0 = inlined_call_operand.hbm [shape: f32[18,64,128], index: 0, kind: input, shape index: {}]   ;;  %s2023_s1 = inlined_call_operand.hbm [shape: f32[2,8,128], index: 1, kind: output, shape index: {}]  }
   0x1   :  { %8 = vsyncpa [#allocation4 + $0x1], 0 }
   0x2   :  { %9 = vsyncpa [#allocation5], 0 }
   0x3   :  { %11 = vsyncpa [#allocation5 + $0x1], 0  ;;  %s1108_s6 = smov 0   ;;  %s1110_s7 = smov 0  }
   0x4   :  { %s1112_s8 = smov 0   ;;  %s1114_s9 = smov 0  }
   0x5   :  { %s1116_s10 = smov 0   ;;  %s1118_s11 = smov 0  }
   0x6 LB: > { %s806_s12 = sadd.s32 4294967295, %s1089_s11   ;;  %s807_s13 = sadd.s32 4294967294, %s1089_s11   ;;  %s1089_s11 = sphi %s1118_s11, %s17_s11   ;;  %s1085_s10 = sphi %s1116_s10, %s2179_s10   ;;  %s1081_s9 = sphi %s1114_s9, %s2178_s9   ;;  %s1077_s8 = sphi %s1112_s8, %s2177_s8   ;;  %s1073_s7 = sphi %s1110_s7, %s2176_s7   ;;  %s1069_s6 = sphi %s1108_s6, %s2175_s6  }
   0x7   : > { %s29_s14 = sadd.s32 1, %s1085_s10  ;;  %s38_s15 = sadd.s32 1, %s1077_s8 }
   0x8   : > { %p31_p0 = scmp.ge.s32.totalorder %s29_s14, 2  ;;  %p45_p1 = scmp.ne.s32.totalorder %s1077_s8, %s1073_s7 }
   0x9   : > { %p46_p2 = scmp.eq.s32.totalorder %s1089_s11, 0  ;;  %p51_p3 = scmp.ne.s32.totalorder %s1073_s7, %s1069_s6 }
   0xa   : > { %s2181_s14 = smov (%p31_p0, %s29_s14), 0  ;;  %p52_p5 = scmp.eq.s32.totalorder %s806_s12, 0 }
   0xb   : > { %p1149_p4 = por %p46_p2, %p45_p1  ;;  %s35_s17 = ssub.s32 %s1085_s10, %s2181_s14 }
   0xc   : > { %p75_p6 = scmp.eq.s32.totalorder %s806_s12, 1  ;;  %p36_p7 = scmp.eq.s32.totalorder %s35_s17, 0 }
   0xd   : > { %p1155_p8 = por %p52_p5, %p51_p3  ;;  %p81_p10 = scmp.eq.s32.totalorder %s807_s13, 1 }
   0xe   : > { %p1159_p9 = por %p75_p6, %p45_p1  ;;  %p2070_p12 = scmp.ge.s32.totalorder %s1089_s11, 2 }
   0xf   : > { %s1164_s20 = scalar_select %p36_p7, %s1077_s8, %s38_s15  }
  0x10   : > { %p1166_p11 = por %p81_p10, %p51_p3  ;;  %97 = sbr.rel (%p2070_p12) target bundleno = 35 (0x23), region = 16 }
  0x15   : > { %s101_s22 = sand.u32 1, %s1077_s8   ;;  %s888_s24 = sshll.u32 %s1085_s10, 9 }
  0x16   : > { %s889_s23 = smul.u32 576, %s101_s22  ;;  %s1091_s25 = smov 1024  }
  0x17   : > { %892 = sst [smem:[#allocation8]] (%p1149_p4), %s1091_s25  ;;  %s112_s29 = scalar_lea.hbm %s2022_s0, %s888_s24 }
  0x18   : > { %s891_s26 = scalar_select %p1149_p4, [#allocation0], [#allocation9] }
  0x19   : > { %s105_s2 = scalar_lea.vmem [#allocation3], %s889_s23  ;;  %s1092_s4 = smov 512  }
  0x1a   : > { %s117_s30 = sld [smem:[%s891_s26]]   ;;  %s125_s3 = sshll.u32 %s105_s2, 4  ;;  %s126_s3 = int_to_ptr.vmem [resolvable:$true] %s125_s3 }
  0x1b   : > { %893 = sst [smem:[#allocation8 + $0x1]] (%p1149_p4), %s1092_s4  ;;  %s1093_s5 = smov 4  }
  0x1c   : > { %894 = sst [smem:[#allocation8 + $0x2]] (%p1149_p4), %s1093_s5  ;;  %s1094_s12 = smov 128  }
  0x1d   : > { %895 = sst [smem:[#allocation8 + $0x3]] (%p1149_p4), %s1094_s12  ;;  %s1095_s13 = smov 8  }
  0x1e   : > { %896 = sst [smem:[#allocation8 + $0x4]] (%p1149_p4), %s1094_s12  ;;  %s102_s23 = scalar_lea.sflag [#allocation4], %s101_s22 }
  0x1f   : > { %897 = sst [smem:[#allocation8 + $0x5]] (%p1149_p4), %s1095_s13  ;;  %s1096_s24 = smov 131072  }
  0x20   : > { %s812_s15 = sshll.u32 %s117_s30, 26 }
  0x21   : > { %s813_s17 = sadd.s32 134217728, %s812_s15 }
  0x22   : > { %898 = dma.general (%p1149_p4), %s112_s29, 9216, %s126_s3, %s102_s23, %s1096_s24, [#allocation8], %s813_s17, 0  }
  0x23 PF: > { %p814_p13 = scmp.ge.s32.totalorder %s1089_s11, 1  ;;  %p146_p0 = scmp.lt.s32.totalorder %s1089_s11, 3 }
  0x25   : > { %p147_p1 = pnand %p814_p13, %p146_p0 }
  0x27   : > { %150 = sbr.rel (%p147_p1) target bundleno = 192 (0xc0), region = 24 }
  0x2c   : > { %s1197_s25 = sand.u32 1, %s1073_s7  }
  0x2d   : > { %s890_s26 = smul.u32 576, %s1197_s25  ;;  %s153_s27 = scalar_lea.sflag [#allocation4], %s1197_s25 }
  0x2f   : > { %s1201_s28 = scalar_lea.vmem [#allocation3], %s890_s26 }
  0x30   : > { %1060 = dma.done.wait (%p1155_p8), %s153_s27, 9216  }
  0x31   : > { %1062 = vsyncadd (%p1155_p8), %s153_s27, 4294958080  ;;  %v1208_v0 = vld [vmem:[%s1201_s28] sm:$0xff]  ;;  %v1220_v4 = vld [vmem:[%s1201_s28 + $0x8] sm:$0xff]  ;;  %s815_s16 = sshll.u32 %s1197_s25, 3  ;;  %s885_s18 = sshll.u32 %s1081_s9, 7 }
  0x32   : > { %v1211_v1 = vld [vmem:[%s1201_s28 + $0x20] sm:$0xff]  ;;  %v1223_v5 = vld [vmem:[%s1201_s28 + $0x10] sm:$0xff]  ;;  %v1226_v6 = vld [vmem:[%s1201_s28 + $0x28] sm:$0xff]  ;;  %s174_s22 = scalar_lea.vmem [#allocation6], %s815_s16  ;;  %s725_s3 = scalar_lea.hbm %s2023_s1, %s885_s18 }
  0x33   : > { %v1214_v2 = vld [vmem:[%s1201_s28 + $0x60] sm:$0xff]  ;;  %v1229_v7 = vld [vmem:[%s1201_s28 + $0x68] sm:$0xff]  ;;  %v1235_v9 = vld [vmem:[%s1201_s28 + $0x30] sm:$0xff]  ;;  %s727_s29 = sshll.u32 %s174_s22, 4  ;;  %s714_s4 = scalar_lea.sflag [#allocation5], %s1197_s25  ;;  %s728_s29 = int_to_ptr.vmem [resolvable:$true] %s727_s29 }
  0x34   : > { %v1217_v3 = vld [vmem:[%s1201_s28 + $0x80] sm:$0xff]  ;;  %v1232_v8 = vld [vmem:[%s1201_s28 + $0x88] sm:$0xff]  ;;  %v1238_v10 = vld [vmem:[%s1201_s28 + $0x70] sm:$0xff]  ;;  %v1245_v12 = vsub.f32 %v1214_v2, %v1208_v0  ;;  %v1271_v20 = vsub.f32 %v1229_v7, %v1220_v4  ;;  %s1009_s5 = scalar_lea.vmem %s728_s29, 128  ;;  %s1097_s12 = smov [#allocation6]  }
  0x35   : > { %v1241_v11 = vld [vmem:[%s1201_s28 + $0x90] sm:$0xff]  ;;  %v1249_v13 = vsub.f32 %v1217_v3, %v1211_v1  ;;  %v1252_v14 = vld [vmem:[%s1201_s28 + $0x18] sm:$0xff]  ;;  %v1255_v15 = vld [vmem:[%s1201_s28 + $0x40] sm:$0xff]  ;;  %v1275_v21 = vsub.f32 %v1232_v8, %v1226_v6  ;;  %v1285_v24 = vsub.f32 %v1238_v10, %v1223_v5  ;;  %p1010_p2 = scmp.ne.s32.totalorder %s728_s29, %s1009_s5  ;;  %s1013_s13 = sshll.u32 %s1097_s12, 4  ;;  %s1014_s13 = int_to_ptr.vmem [resolvable:$false] %s1013_s13 }
  0x36   : > { %2075 = vst [vmem:[#allocation12_spill] sm:$0xff] %v1245_v12  ;;  %v1258_v16 = vld [vmem:[%s1201_s28 + $0xa0] sm:$0xff]  ;;  %v1261_v17 = vld [vmem:[%s1201_s28 + $0x38] sm:$0xff]  ;;  %2079 = vst [vmem:[#allocation16_spill] sm:$0xff] %v1271_v20  ;;  %v1289_v25 = vsub.f32 %v1241_v11, %v1235_v9  ;;  %v286_v29 = vmul.f32 %v1245_v12, %v1245_v12  ;;  %v287_v36 = vmul.f32 %v1271_v20, %v1271_v20  ;;  %s1015_s9 = scalar_lea.vmem %s1014_s13, 256  ;;  %p1016_p5 = scmp.lt.s32.totalorder %s728_s29, %s1014_s13 }
  0x37   : > { %2076 = vst [vmem:[#allocation13_spill] sm:$0xff] %v1249_v13  ;;  %v1264_v18 = vld [vmem:[%s1201_s28 + $0x78] sm:$0xff]  ;;  %2080 = vst [vmem:[#allocation17_spill] sm:$0xff] %v1275_v21  ;;  %v1278_v22 = vld [vmem:[%s1201_s28 + $0x48] sm:$0xff]  ;;  %v1299_v28 = vsub.f32 %v1258_v16, %v1255_v15  ;;  %v290_v30 = vmul.f32 %v1249_v13, %v1249_v13  ;;  %v291_v37 = vmul.f32 %v1275_v21, %v1275_v21  ;;  %p1011_p3 = pnand %p1010_p2, %p1159_p9  ;;  %p1017_p6 = scmp.lt.s32.totalorder %s1015_s9, %s1009_s5 }
  0x38   : > { %2077 = vst [vmem:[#allocation14_spill] sm:$0xff] %v1264_v18  ;;  %v1267_v19 = vld [vmem:[%s1201_s28 + $0x98] sm:$0xff]  ;;  %v1281_v23 = vld [vmem:[%s1201_s28 + $0xa8] sm:$0xff]  ;;  %2081 = vst [vmem:[#allocation18_spill] sm:$0xff] %v1285_v24  ;;  %v1307_v31 = vsub.f32 %v1264_v18, %v1252_v14  ;;  %v288_v39 = vmul.f32 %v1285_v24, %v1285_v24  ;;  %v292_v40 = vmul.f32 %v1289_v25, %v1289_v25 }
  0x39   : > { %2078 = vst [vmem:[#allocation15_spill] sm:$0xff] %v1267_v19  ;;  %2082 = vst [vmem:[#allocation19_spill] sm:$0xff] %v1289_v25  ;;  %v1292_v26 = vld [vmem:[%s1201_s28 + $0x50] sm:$0xff]  ;;  %v1311_v32 = vsub.f32 %v1267_v19, %v1261_v17  ;;  %v1314_v33 = vld [vmem:[%s1201_s28 + $0x58] sm:$0xff]  ;;  %v1321_v35 = vsub.f32 %v1281_v23, %v1278_v22  ;;  %v294_v41 = vadd.f32 %v290_v30, %v286_v29  ;;  %p1012_p4 = pneg %p1011_p3  ;;  %p1018_p7 = por %p1017_p6, %p1016_p5 }
  0x3a   : > { %v1295_v27 = vld [vmem:[%s1201_s28 + $0xb0] sm:$0xff]  ;;  %2083 = vst [vmem:[#allocation20_spill] sm:$0xff] %v1299_v28  ;;  %2084 = vst [vmem:[#allocation21_spill] sm:$0xff] %v1307_v31  ;;  %v1317_v34 = vld [vmem:[%s1201_s28 + $0xb8] sm:$0xff]  ;;  %v298_v42 = vmul.f32 %v1299_v28, %v1299_v28  ;;  %v289_v44 = vmul.f32 %v1307_v31, %v1307_v31  ;;  %v295_v46 = vadd.f32 %v291_v37, %v287_v36 }
  0x3b   : > { %2085 = vst [vmem:[#allocation22_spill] sm:$0xff] %v1311_v32  ;;  %2086 = vst [vmem:[#allocation23_spill] sm:$0xff] %v1317_v34  ;;  %v1329_v38 = vsub.f32 %v1295_v27, %v1292_v26  ;;  %v1339_v43 = vsub.f32 %v1317_v34, %v1314_v33  ;;  %v293_v45 = vmul.f32 %v1311_v32, %v1311_v32  ;;  %v1350_v50 = vld [vmem:[%s1201_s28 + $0xc0] sm:$0xff]  ;;  %v1353_v51 = vld [vmem:[%s1201_s28 + $0xc8] sm:$0xff]  ;;  %p1019_p8 = pnand %p1018_p7, %p1012_p4 }
  0x3c   : > { %2087 = vst [vmem:[#allocation24_spill] sm:$0xff] %v1321_v35  ;;  %v299_v47 = vmul.f32 %v1321_v35, %v1321_v35  ;;  %v296_v48 = vadd.f32 %v292_v40, %v288_v39  ;;  %v302_v52 = vadd.f32 %v298_v42, %v294_v41  ;;  %v1356_v53 = vld [vmem:[%s1201_s28 + $0xd0] sm:$0xff]  ;;  %v1359_v54 = vld [vmem:[%s1201_s28 + $0xd8] sm:$0xff]  ;;  %v1362_v55 = vld [vmem:[%s1201_s28 + $0xe0] sm:$0xff]  ;;  %v1399_v41 = vsub.f32 %v1350_v50, %v1208_v0 }
  0x3d   : > { %2088 = vst [vmem:[#allocation25_spill] sm:$0xff] %v1329_v38  ;;  %2089 = vst [vmem:[#allocation26_spill] sm:$0xff] %v1339_v43  ;;  %v300_v49 = vmul.f32 %v1329_v38, %v1329_v38  ;;  %v297_v56 = vadd.f32 %v293_v45, %v289_v44  ;;  %v301_v57 = vmul.f32 %v1339_v43, %v1339_v43  ;;  %v1367_v58 = vld [vmem:[%s1201_s28 + $0xe8] sm:$0xff]  ;;  %v1370_v59 = vld [vmem:[%s1201_s28 + $0xf0] sm:$0xff] }
  0x3e   : > { %2090 = vst [vmem:[#allocation27_spill] sm:$0xff] %v1359_v54  ;;  %v1373_v60 = vld [vmem:[%s1201_s28 + $0xf8] sm:$0xff]  ;;  %v1375_v61 = vadd.f32 %v299_v47, %v295_v46  ;;  %v1378_v62 = vld [vmem:[%s1201_s28 + $0x100] sm:$0xff]  ;;  %v1381_v63 = vld [vmem:[%s1201_s28 + $0x108] sm:$0xff]  ;;  %v306_v40 = vmax.f32 %v302_v52, 1e-24  ;;  %v1403_v42 = vsub.f32 %v1353_v51, %v1220_v4  ;;  %v1407_v44 = vsub.f32 %v1356_v53, %v1223_v5 }
  0x3f   : > { %2091 = vst [vmem:[#allocation28_spill] sm:$0xff] %v1373_v60  ;;  %v1384_v29 = vld [vmem:[%s1201_s28 + $0x110] sm:$0xff]  ;;  %v1386_v30 = vadd.f32 %v300_v49, %v296_v48  ;;  %v1389_v36 = vld [vmem:[%s1201_s28 + $0x118] sm:$0xff]  ;;  %v1392_v37 = vld [vmem:[%s1201_s28 + $0x120] sm:$0xff]  ;;  %v1422_v49 = vadd.f32 %v301_v57, %v297_v56  ;;  %v1426_v4 = vsub.f32 %v1359_v54, %v1252_v14  ;;  %v1430_v5 = vsub.f32 %v1362_v55, %v1211_v1 }
  0x40   : > { %2092 = vst [vmem:[#allocation29_spill] sm:$0xff] %v1375_v61  ;;  %2094 = vst [vmem:[#allocation31_spill] sm:$0xff] %v1389_v36  ;;  %v1395_v39 = vld [vmem:[%s1201_s28 + $0x128] sm:$0xff]  ;;  %v1410_v45 = vld [vmem:[%s1201_s28 + $0x130] sm:$0xff]  ;;  %v1434_v52 = vsub.f32 %v1367_v58, %v1226_v6  ;;  %v1450_v1 = vsub.f32 %v1370_v59, %v1235_v9  ;;  %v1454_v6 = vsub.f32 %v1373_v60, %v1261_v17  ;;  %961 = vrsqrt.f32 %v306_v40 }
  0x41   : > { %2093 = vst [vmem:[#allocation30_spill] sm:$0xff] %v1386_v30  ;;  %2095 = vst [vmem:[#allocation32_spill] sm:$0xff] %v1399_v41  ;;  %v1413_v46 = vld [vmem:[%s1201_s28 + $0x138] sm:$0xff]  ;;  %v1416_v47 = vld [vmem:[%s1201_s28 + $0x140] sm:$0xff]  ;;  %v1458_v25 = vsub.f32 %v1378_v62, %v1255_v15  ;;  %v1466_v9 = vsub.f32 %v1381_v63, %v1278_v22  ;;  %v1470_v17 = vsub.f32 %v1384_v29, %v1292_v26 }
  0x42   : > { %2096 = vst [vmem:[#allocation33_spill] sm:$0xff] %v1403_v42  ;;  %2097 = vst [vmem:[#allocation34_spill] sm:$0xff] %v1407_v44  ;;  %v1419_v48 = vld [vmem:[%s1201_s28 + $0x148] sm:$0xff]  ;;  %v860_v0 = vld [vmem:[%s1201_s28 + $0x180] sm:$0xff]  ;;  %v1474_v15 = vsub.f32 %v1389_v36, %v1314_v33  ;;  %v338_v38 = vmul.f32 %v1399_v41, %v1399_v41  ;;  %v339_v22 = vmul.f32 %v1403_v42, %v1403_v42 }
  0x43   : > { %2098 = vst [vmem:[#allocation35_spill] sm:$0xff] %v1422_v49  ;;  %2099 = vst [vmem:[#allocation36_spill] sm:$0xff] %v1426_v4  ;;  %v1437_v43 = vld [vmem:[%s1201_s28 + $0x150] sm:$0xff]  ;;  %v1440_v32 = vld [vmem:[%s1201_s28 + $0x158] sm:$0xff]  ;;  %v1484_v26 = vsub.f32 %v860_v0, %v1392_v37  ;;  %v340_v34 = vmul.f32 %v1407_v44, %v1407_v44  ;;  %v341_v40 = vmul.f32 %v1426_v4, %v1426_v4 }
  0x44   : > { %2100 = vst [vmem:[#allocation37_spill] sm:$0xff] %v1430_v5  ;;  %2101 = vst [vmem:[#allocation38_spill] sm:$0xff] %v1434_v52  ;;  %v1443_v56 = vld [vmem:[%s1201_s28 + $0x160] sm:$0xff]  ;;  %v861_v57 = vld [vmem:[%s1201_s28 + $0x188] sm:$0xff] }
  0x45   : > { %v862_v14 = vld [vmem:[%s1201_s28 + $0x190] sm:$0xff]  ;;  %2102 = vst [vmem:[#allocation39_spill] sm:$0xff] %v1450_v1  ;;  %2103 = vst [vmem:[#allocation40_spill] sm:$0xff] %v1454_v6  ;;  %v863_v31 = vld [vmem:[%s1201_s28 + $0x198] sm:$0xff]  ;;  %v1499_v41 = vsub.f32 %v861_v57, %v1395_v39  ;;  %v342_v57 = vmul.f32 %v1430_v5, %v1430_v5  ;;  %v442_v5 = vmul.f32 %v1484_v26, %v1484_v26 }
  0x46   : > { %2104 = vst [vmem:[#allocation41_spill] sm:$0xff] %v1458_v25  ;;  %v864_v24 = vld [vmem:[%s1201_s28 + $0x1a0] sm:$0xff]  ;;  %v865_v35 = vld [vmem:[%s1201_s28 + $0x1a8] sm:$0xff]  ;;  %2105 = vst [vmem:[#allocation42_spill] sm:$0xff] %v1466_v9  ;;  %v1507_v61 = vsub.f32 %v862_v14, %v1410_v45  ;;  %v1510_v60 = vsub.f32 %v863_v31, %v1413_v46  ;;  %v343_v31 = vmul.f32 %v1434_v52, %v1434_v52 }
  0x47   : > { %v866_v28 = vld [vmem:[%s1201_s28 + $0x1b0] sm:$0xff]  ;;  %v867_v21 = vld [vmem:[%s1201_s28 + $0x1b8] sm:$0xff]  ;;  %v868_v20 = vld [vmem:[%s1201_s28 + $0x1c0] sm:$0xff]  ;;  %2106 = vst [vmem:[#allocation43_spill] sm:$0xff] %v1484_v26  ;;  %v1513_v36 = vsub.f32 %v864_v24, %v1416_v47  ;;  %v1516_v44 = vsub.f32 %v865_v35, %v1419_v48  ;;  %v344_v24 = vmul.f32 %v1450_v1, %v1450_v1  ;;  %v443_v52 = vmul.f32 %v1499_v41, %v1499_v41 }
  0x48   : > { %v1487_v13 = vld [vmem:[%s1201_s28 + $0x168] sm:$0xff]  ;;  %v1490_v12 = vld [vmem:[%s1201_s28 + $0x170] sm:$0xff]  ;;  %2107 = vst [vmem:[#allocation44_spill] sm:$0xff] %v1499_v41  ;;  %v1502_v42 = vld [vmem:[%s1201_s28 + $0x178] sm:$0xff]  ;;  %v1521_v4 = vsub.f32 %v866_v28, %v1437_v43  ;;  %v1524_v49 = vsub.f32 %v867_v21, %v1440_v32  ;;  %v1527_v14 = vsub.f32 %v868_v20, %v1443_v56  ;;  %v345_v28 = vmul.f32 %v1454_v6, %v1454_v6 }
  0x49   : > { %v869_v33 = vld [vmem:[%s1201_s28 + $0x1c8] sm:$0xff]  ;;  %v870_v0 = vld [vmem:[%s1201_s28 + $0x1d0] sm:$0xff]  ;;  %v871_v30 = vld [vmem:[%s1201_s28 + $0x1d8] sm:$0xff]  ;;  %2108 = vst [vmem:[#allocation45_spill] sm:$0xff] %v1507_v61  ;;  %v444_v1 = vmul.f32 %v1507_v61, %v1507_v61  ;;  %v446_v26 = vmul.f32 %v1513_v36, %v1513_v36  ;;  %v1568_v41 = vmul.f32 %v1466_v9, %v1466_v9  ;;  %v1577_v18 = vadd.f32 %v342_v57, %v338_v38 }
  0x4a   : > { %2109 = vst [vmem:[#allocation46_spill] sm:$0xff] %v1510_v60  ;;  %2110 = vst [vmem:[#allocation47_spill] sm:$0xff] %v1513_v36  ;;  %v1534_v35 = vsub.f32 %v869_v33, %v1487_v13  ;;  %v1541_v21 = vsub.f32 %v870_v0, %v1490_v12  ;;  %v1544_v20 = vsub.f32 %v871_v30, %v1502_v42  ;;  %v872_v54 = vld [vmem:[%s1201_s28 + $0x1e0] sm:$0xff] }
  0x4b   : > { %2111 = vst [vmem:[#allocation48_spill] sm:$0xff] %v1516_v44  ;;  %2112 = vst [vmem:[#allocation49_spill] sm:$0xff] %v1521_v4  ;;  %v445_v33 = vmul.f32 %v1510_v60, %v1510_v60  ;;  %v447_v0 = vmul.f32 %v1516_v44, %v1516_v44  ;;  %v1558_v30 = vmul.f32 %v1458_v25, %v1458_v25 }
  0x4c   : > { %2113 = vst [vmem:[#allocation50_spill] sm:$0xff] %v1524_v49  ;;  %2114 = vst [vmem:[#allocation51_spill] sm:$0xff] %v1527_v14  ;;  %v448_v6 = vmul.f32 %v1521_v4, %v1521_v4  ;;  %v449_v61 = vmul.f32 %v1524_v49, %v1524_v49  ;;  %v454_v60 = vmul.f32 %v1527_v14, %v1527_v14 }
  0x4d   : > { %v450_v44 = vadd.f32 %v446_v26, %v442_v5  ;;  %v451_v36 = vadd.f32 %v447_v0, %v443_v52  ;;  %v455_v25 = vmul.f32 %v1534_v35, %v1534_v35  ;;  %v456_v49 = vmul.f32 %v1541_v21, %v1541_v21 }
  0x4e   : > { %v452_v19 = vadd.f32 %v448_v6, %v444_v1  ;;  %v453_v4 = vadd.f32 %v449_v61, %v445_v33  ;;  %v457_v14 = vmul.f32 %v1544_v20, %v1544_v20  ;;  %v1579_v9 = vadd.f32 %v343_v31, %v339_v22  ;;  %v873_v1 = vld [vmem:[%s1201_s28 + $0x1e8] sm:$0xff]  ;;  %v874_v61 = vld [vmem:[%s1201_s28 + $0x1f0] sm:$0xff]  ;;  %v875_v6 = vld [vmem:[%s1201_s28 + $0x1f8] sm:$0xff] }
  0x4f   : > { %v1581_v5 = vadd.f32 %v344_v24, %v340_v34  ;;  %v458_v52 = vadd.f32 %v454_v60, %v450_v44  ;;  %v1586_v26 = vadd.f32 %v345_v28, %v341_v40  ;;  %v1590_v33 = vmul.f32 %v1470_v17, %v1470_v17  ;;  %v876_v60 = vld [vmem:[%s1201_s28 + $0x200] sm:$0xff]  ;;  %v877_v44 = vld [vmem:[%s1201_s28 + $0x208] sm:$0xff]  ;;  %v878_v22 = vld [vmem:[%s1201_s28 + $0x210] sm:$0xff] }
  0x50   : > { %v1594_v38 = vsub.f32 %v1350_v50, %v1214_v2  ;;  %v1598_v34 = vsub.f32 %v1353_v51, %v1229_v7  ;;  %v1605_v57 = vsub.f32 %v1356_v53, %v1238_v10  ;;  %v1609_v40 = vsub.f32 %v1362_v55, %v1217_v3  ;;  %v1619_v50 = vpop.eup %961  ;;  %v879_v51 = vld [vmem:[%s1201_s28 + $0x218] sm:$0xff]  ;;  %v880_v31 = vld [vmem:[%s1201_s28 + $0x220] sm:$0xff]  ;;  %v881_v10 = vld [vmem:[%s1201_s28 + $0x228] sm:$0xff] }
  0x51   : > { %v1613_v2 = vsub.f32 %v1367_v58, %v1232_v8  ;;  %v1617_v7 = vsub.f32 %v1370_v59, %v1241_v11  ;;  %v459_v53 = vadd.f32 %v455_v25, %v451_v36  ;;  %v460_v24 = vadd.f32 %v456_v49, %v452_v19  ;;  %v882_v58 = vld [vmem:[%s1201_s28 + $0x230] sm:$0xff]  ;;  %v883_v59 = vld [vmem:[%s1201_s28 + $0x238] sm:$0xff] }
  0x52   : > { %2115 = vst [vmem:[#allocation52_spill] sm:$0xff] %v1605_v57  ;;  %v461_v28 = vadd.f32 %v457_v14, %v453_v4  ;;  %v462_v0 = vmax.f32 %v458_v52, 1e-24  ;;  %v1626_v3 = vsub.f32 %v1378_v62, %v1258_v16  ;;  %v1630_v8 = vsub.f32 %v1381_v63, %v1281_v23 }
  0x53   : > { %2116 = vst [vmem:[#allocation53_spill] sm:$0xff] %v1617_v7  ;;  %v1633_v11 = vsub.f32 %v872_v54, %v1392_v37  ;;  %v1636_v55 = vsub.f32 %v873_v1, %v1395_v39  ;;  %v1641_v19 = vsub.f32 %v874_v61, %v1410_v45  ;;  %v1644_v25 = vsub.f32 %v875_v6, %v1413_v46 }
  0x54   : > { %v1647_v16 = vsub.f32 %v876_v60, %v1416_v47  ;;  %v1650_v23 = vsub.f32 %v877_v44, %v1419_v48  ;;  %v1653_v54 = vsub.f32 %v878_v22, %v1437_v43  ;;  %v1656_v62 = vsub.f32 %v879_v51, %v1440_v32 }
  0x55   : > { %v1659_v63 = vsub.f32 %v880_v31, %v1443_v56  ;;  %v1662_v36 = vsub.f32 %v881_v10, %v1487_v13  ;;  %v463_v37 = vmax.f32 %v459_v53, 1e-24  ;;  %v464_v39 = vmax.f32 %v460_v24, 1e-24 }
  0x56   : > { %v465_v45 = vmax.f32 %v461_v28, 1e-24  ;;  %963 = vrsqrt.f32 %v462_v0  ;;  %v1665_v46 = vsub.f32 %v882_v58, %v1490_v12  ;;  %v1668_v47 = vsub.f32 %v883_v59, %v1502_v42 }
  0x57   : > { %v494_v32 = vmul.f32 %v1633_v11, %v1633_v11  ;;  %v495_v43 = vmul.f32 %v1636_v55, %v1636_v55  ;;  %v496_v13 = vmul.f32 %v1641_v19, %v1641_v19  ;;  %v497_v48 = vmul.f32 %v1644_v25, %v1644_v25 }
  0x58   : > { %v498_v49 = vmul.f32 %v1647_v16, %v1647_v16  ;;  %v499_v12 = vmul.f32 %v1650_v23, %v1650_v23  ;;  %v500_v42 = vmul.f32 %v1653_v54, %v1653_v54  ;;  %v501_v4 = vmul.f32 %v1656_v62, %v1656_v62 }
  0x59   : > { %v506_v56 = vmul.f32 %v1659_v63, %v1659_v63  ;;  %v507_v14 = vmul.f32 %v1662_v36, %v1662_v36  ;;  %v508_v61 = vmul.f32 %v1665_v46, %v1665_v46  ;;  %v509_v6 = vmul.f32 %v1668_v47, %v1668_v47 }
  0x5a   : > { %v502_v52 = vadd.f32 %v498_v49, %v494_v32  ;;  %v503_v1 = vadd.f32 %v499_v12, %v495_v43  ;;  %v1696_v60 = vsub.f32 %v1384_v29, %v1295_v27  ;;  %965 = vrsqrt.f32 %v463_v37  ;;  %v2118_v49 = vld [vmem:[#allocation14_spill] sm:$0xff]  ;;  %v2119_v12 = vld [vmem:[#allocation27_spill] sm:$0xff] }
  0x5b   : > { %v504_v44 = vadd.f32 %v500_v42, %v496_v13  ;;  %v505_v22 = vadd.f32 %v501_v4, %v497_v48  ;;  %v390_v51 = vmul.f32 %v1594_v38, %v1594_v38  ;;  %967 = vrsqrt.f32 %v464_v39  ;;  %v2121_v4 = vld [vmem:[#allocation15_spill] sm:$0xff] }
  0x5c   : > { %2117 = vst [vmem:[#allocation54_spill] sm:$0xff] %v1696_v60  ;;  %v510_v31 = vadd.f32 %v506_v56, %v502_v52  ;;  %v511_v10 = vadd.f32 %v507_v14, %v503_v1  ;;  %v391_v53 = vmul.f32 %v1598_v34, %v1598_v34  ;;  %969 = vrsqrt.f32 %v465_v45  ;;  %v2122_v56 = vld [vmem:[#allocation28_spill] sm:$0xff]  ;;  %v2124_v1 = vld [vmem:[#allocation29_spill] sm:$0xff] }
  0x5d   : > { %v512_v24 = vadd.f32 %v508_v61, %v504_v44  ;;  %v513_v28 = vadd.f32 %v509_v6, %v505_v22  ;;  %v392_v0 = vmul.f32 %v1605_v57, %v1605_v57  ;;  %v394_v27 = vmul.f32 %v1609_v40, %v1609_v40  ;;  %v2126_v44 = vld [vmem:[#allocation30_spill] sm:$0xff] }
  0x5e   : > { %v514_v29 = vmax.f32 %v510_v31, 1e-24  ;;  %v515_v58 = vmax.f32 %v511_v10, 1e-24  ;;  %v395_v59 = vmul.f32 %v1613_v2, %v1613_v2  ;;  %v396_v37 = vmul.f32 %v1617_v7, %v1617_v7 }
  0x5f   : > { %v516_v39 = vmax.f32 %v512_v24, 1e-24  ;;  %v517_v32 = vmax.f32 %v513_v28, 1e-24  ;;  %v353_v45 = vmul.f32 %v1474_v15, %v1474_v15  ;;  %v354_v43 = vadd.f32 %v1558_v30, %v1577_v18  ;;  %v2128_v24 = vld [vmem:[#allocation23_spill] sm:$0xff] }
  0x60   : > { %v355_v13 = vadd.f32 %v1568_v41, %v1579_v9  ;;  %971 = vrsqrt.f32 %v514_v29  ;;  %v356_v48 = vadd.f32 %v1590_v33, %v1581_v5  ;;  %v1720_v42 = vsub.f32 %v2119_v12, %v2118_v49  ;;  %v2129_v28 = vld [vmem:[#allocation31_spill] sm:$0xff] }
  0x61   : > { %v1724_v14 = vsub.f32 %v2122_v56, %v2121_v4  ;;  %973 = vrsqrt.f32 %v515_v58  ;;  %v398_v52 = vadd.f32 %v394_v27, %v390_v51  ;;  %v402_v18 = vmul.f32 %v1626_v3, %v1626_v3  ;;  %v2131_v58 = vld [vmem:[#allocation35_spill] sm:$0xff] }
  0x62   : > { %2120 = vst [vmem:[#allocation14_spill] sm:$0xff] %v1720_v42  ;;  %v403_v41 = vmul.f32 %v1630_v8, %v1630_v8  ;;  %975 = vrsqrt.f32 %v516_v39  ;;  %v399_v30 = vadd.f32 %v395_v59, %v391_v53  ;;  %v400_v5 = vadd.f32 %v396_v37, %v392_v0  ;;  %v2133_v56 = vld [vmem:[#allocation43_spill] sm:$0xff] }
  0x63   : > { %2123 = vst [vmem:[#allocation27_spill] sm:$0xff] %v1724_v14  ;;  %v964_v9 = vpop.eup %963  ;;  %v404_v33 = vmul.f32 %v1696_v60, %v1696_v60  ;;  %977 = vrsqrt.f32 %v517_v32  ;;  %v2125_v61 = vmax.f32 %v2124_v1, 1e-24  ;;  %v358_v6 = vmax.f32 %v354_v43, 1e-24 }
  0x64   : > { %v2127_v22 = vmax.f32 %v2126_v44, 1e-24  ;;  %v1737_v51 = vadd.f32 %v353_v45, %v1586_v26  ;;  %v359_v31 = vmax.f32 %v355_v13, 1e-24  ;;  %v360_v10 = vmax.f32 %v356_v48, 1e-24 }
  0x65   : > { %979 = vrsqrt.f32 %v2125_v61  ;;  %v1741_v53 = vsub.f32 %v2129_v28, %v2128_v24  ;;  %v393_v0 = vmul.f32 %v1720_v42, %v1720_v42  ;;  %v397_v27 = vmul.f32 %v1724_v14, %v1724_v14  ;;  %v2137_v61 = vld [vmem:[#allocation51_spill] sm:$0xff]  ;;  %v2139_v24 = vld [vmem:[#allocation46_spill] sm:$0xff] }
  0x66   : > { %981 = vrsqrt.f32 %v2127_v22  ;;  %v1747_v29 = vadd.f32 %v402_v18, %v398_v52  ;;  %v2132_v59 = vmax.f32 %v2131_v58, 1e-24  ;;  %v1751_v37 = vadd.f32 %v403_v41, %v399_v30  ;;  %v2134_v18 = vld [vmem:[#allocation47_spill] sm:$0xff]  ;;  %v2135_v30 = vld [vmem:[#allocation44_spill] sm:$0xff] }
  0x67   : > { %2130 = vst [vmem:[#allocation15_spill] sm:$0xff] %v1741_v53  ;;  %v1753_v26 = vadd.f32 %v404_v33, %v400_v5  ;;  %v966_v39 = vpop.eup %965  ;;  %v1756_v13 = vadd.f32 %v397_v27, %v393_v0  ;;  %v1760_v48 = vmul.f32 %v1741_v53, %v1741_v53  ;;  %v470_v52 = vmul.f32 %v964_v9, %v2133_v56  ;;  %v2136_v33 = vld [vmem:[#allocation48_spill] sm:$0xff]  ;;  %v2140_v0 = vld [vmem:[#allocation49_spill] sm:$0xff]  ;;  %v2141_v56 = vld [vmem:[#allocation50_spill] sm:$0xff] }
  0x68   : > { %983 = vrsqrt.f32 %v2132_v59  ;;  %v968_v32 = vpop.eup %967  ;;  %v474_v41 = vmul.f32 %v964_v9, %v2134_v18  ;;  %v471_v5 = vmul.f32 %v966_v39, %v2135_v30  ;;  %v475_v1 = vmul.f32 %v966_v39, %v2136_v33 }
  0x69   : > { %985 = vrsqrt.f32 %v358_v6  ;;  %v970_v43 = vpop.eup %969  ;;  %v478_v6 = vmul.f32 %v964_v9, %v2137_v61  ;;  %v479_v44 = vmul.f32 %v966_v39, %v1534_v35  ;;  %v476_v27 = vmul.f32 %v968_v32, %v2140_v0 }
  0x6a   : > { %987 = vrsqrt.f32 %v359_v31  ;;  %v2138_v31 = vld [vmem:[#allocation45_spill] sm:$0xff]  ;;  %v473_v28 = vmul.f32 %v970_v43, %v2139_v24  ;;  %v480_v58 = vmul.f32 %v968_v32, %v1541_v21  ;;  %v477_v18 = vmul.f32 %v970_v43, %v2141_v56 }
  0x6b   : > { %989 = vrsqrt.f32 %v360_v10  ;;  %v472_v10 = vmul.f32 %v968_v32, %v2138_v31  ;;  %v481_v30 = vmul.f32 %v970_v43, %v1544_v20 }
  0x6d   : > { %v972_v22 = vpop.eup %971 }
  0x6e   : > { %v974_v59 = vpop.eup %973  ;;  %v526_v33 = vmul.f32 %v972_v22, %v1647_v16  ;;  %v530_v9 = vmul.f32 %v972_v22, %v1659_v63  ;;  %v522_v35 = vmul.f32 %v972_v22, %v1633_v11 }
  0x6f   : > { %v976_v61 = vpop.eup %975  ;;  %v523_v39 = vmul.f32 %v974_v59, %v1636_v55  ;;  %v527_v31 = vmul.f32 %v974_v59, %v1650_v23  ;;  %v531_v24 = vmul.f32 %v974_v59, %v1662_v36 }
  0x70   : > { %v978_v0 = vpop.eup %977  ;;  %v524_v21 = vmul.f32 %v976_v61, %v1641_v19  ;;  %v528_v32 = vmul.f32 %v976_v61, %v1653_v54  ;;  %v532_v20 = vmul.f32 %v976_v61, %v1665_v46  ;;  %v534_v43 = vmul.f32 %v530_v9, %v474_v41 }
  0x71   : > { %v525_v63 = vmul.f32 %v978_v0, %v1644_v25  ;;  %v529_v11 = vmul.f32 %v978_v0, %v1656_v62  ;;  %v533_v55 = vmul.f32 %v978_v0, %v1668_v47  ;;  %v535_v22 = vmul.f32 %v531_v24, %v475_v1 }
  0x72   : > { %v1786_v16 = vpop.eup %979  ;;  %v536_v36 = vmul.f32 %v532_v20, %v476_v27  ;;  %v538_v59 = vmul.f32 %v526_v33, %v478_v6  ;;  %v539_v56 = vmul.f32 %v527_v31, %v479_v44  ;;  %v540_v19 = vmul.f32 %v528_v32, %v480_v58 }
  0x73   : > { %v1791_v23 = vpop.eup %981  ;;  %v537_v4 = vmul.f32 %v533_v55, %v477_v18  ;;  %v541_v54 = vmul.f32 %v529_v11, %v481_v30  ;;  %v546_v12 = vmul.f32 %v522_v35, %v478_v6  ;;  %v547_v46 = vmul.f32 %v523_v39, %v479_v44 }
  0x74   : > { %v1795_v49 = vsub.f32 %v534_v43, %v538_v59  ;;  %v1797_v25 = vsub.f32 %v535_v22, %v539_v56  ;;  %v1799_v62 = vsub.f32 %v536_v36, %v540_v19  ;;  %v548_v47 = vmul.f32 %v524_v21, %v480_v58 }
  0x75   : > { %v1793_v61 = vpop.eup %983  ;;  %v1803_v45 = vsub.f32 %v537_v4, %v541_v54  ;;  %v549_v53 = vmul.f32 %v525_v63, %v481_v30  ;;  %v550_v60 = vmul.f32 %v530_v9, %v470_v52  ;;  %v551_v14 = vmul.f32 %v531_v24, %v471_v5 }
  0x76   : > { %v1801_v0 = vpop.eup %985  ;;  %v552_v6 = vmul.f32 %v532_v20, %v472_v10  ;;  %v553_v44 = vmul.f32 %v533_v55, %v473_v28  ;;  %v558_v7 = vmul.f32 %v526_v33, %v470_v52  ;;  %v559_v57 = vmul.f32 %v527_v31, %v471_v5 }
  0x77   : > { %v1805_v42 = vpop.eup %987  ;;  %v1809_v22 = vsub.f32 %v546_v12, %v550_v60  ;;  %v1811_v36 = vsub.f32 %v547_v46, %v551_v14  ;;  %v560_v58 = vmul.f32 %v528_v32, %v472_v10  ;;  %v561_v59 = vmul.f32 %v529_v11, %v473_v28 }
  0x78   : > { %v1807_v43 = vpop.eup %989  ;;  %v1813_v56 = vsub.f32 %v548_v47, %v552_v6  ;;  %v1815_v4 = vsub.f32 %v549_v53, %v553_v44  ;;  %v562_v30 = vmul.f32 %v522_v35, %v474_v41  ;;  %v563_v9 = vmul.f32 %v523_v39, %v475_v1 }
  0x79   : > { %v564_v24 = vmul.f32 %v524_v21, %v476_v27  ;;  %v565_v19 = vmul.f32 %v525_v63, %v477_v18  ;;  %v570_v52 = vmul.f32 %v1795_v49, %v1795_v49  ;;  %v571_v5 = vmul.f32 %v1797_v25, %v1797_v25 }
  0x7a   : > { %v1821_v60 = vsub.f32 %v558_v7, %v562_v30  ;;  %v1823_v14 = vsub.f32 %v559_v57, %v563_v9  ;;  %v572_v12 = vmul.f32 %v1799_v62, %v1799_v62  ;;  %v573_v53 = vmul.f32 %v1803_v45, %v1803_v45  ;;  %v2146_v9 = vld [vmem:[#allocation12_spill] sm:$0xff] }
  0x7b   : > { %v1829_v41 = vsub.f32 %v560_v58, %v564_v24  ;;  %v1831_v1 = vsub.f32 %v561_v59, %v565_v19  ;;  %v574_v10 = vmul.f32 %v1809_v22, %v1809_v22  ;;  %v575_v28 = vmul.f32 %v1811_v36, %v1811_v36  ;;  %v2147_v24 = vld [vmem:[#allocation13_spill] sm:$0xff] }
  0x7c   : > { %v576_v57 = vmul.f32 %v1813_v56, %v1813_v56  ;;  %v577_v7 = vmul.f32 %v1815_v4, %v1815_v4  ;;  %v582_v27 = vmul.f32 %v1821_v60, %v1821_v60  ;;  %v583_v18 = vmul.f32 %v1823_v14, %v1823_v14 }
  0x7d   : > { %v578_v33 = vadd.f32 %v574_v10, %v570_v52  ;;  %v579_v35 = vadd.f32 %v575_v28, %v571_v5  ;;  %v584_v39 = vmul.f32 %v1829_v41, %v1829_v41  ;;  %v585_v31 = vmul.f32 %v1831_v1, %v1831_v1  ;;  %v2150_v5 = vld [vmem:[#allocation20_spill] sm:$0xff] }
  0x7e   : > { %v2142_v21 = vmax.f32 %v1737_v51, 1e-24  ;;  %v580_v32 = vadd.f32 %v576_v57, %v572_v12  ;;  %v581_v20 = vadd.f32 %v577_v7, %v573_v53  ;;  %v2143_v63 = vmax.f32 %v1747_v29, 1e-24  ;;  %v2151_v53 = vld [vmem:[#allocation24_spill] sm:$0xff]  ;;  %v2152_v57 = vld [vmem:[#allocation18_spill] sm:$0xff] }
  0x7f   : > { %v586_v11 = vadd.f32 %v582_v27, %v578_v33  ;;  %v587_v55 = vadd.f32 %v583_v18, %v579_v35  ;;  %v2144_v54 = vmax.f32 %v1751_v37, 1e-24  ;;  %v409_v6 = vadd.f32 %v1760_v48, %v1756_v13  ;;  %v2148_v13 = vld [vmem:[#allocation16_spill] sm:$0xff]  ;;  %v2149_v48 = vld [vmem:[#allocation17_spill] sm:$0xff]  ;;  %v2154_v33 = vld [vmem:[#allocation19_spill] sm:$0xff] }
  0x80   : > { %991 = vrsqrt.f32 %v2142_v21  ;;  %v588_v46 = vadd.f32 %v584_v39, %v580_v32  ;;  %v589_v47 = vadd.f32 %v585_v31, %v581_v20  ;;  %v2145_v44 = vmax.f32 %v1753_v26, 1e-24  ;;  %v2153_v27 = vld [vmem:[#allocation21_spill] sm:$0xff]  ;;  %v2156_v32 = vld [vmem:[#allocation22_spill] sm:$0xff] }
  0x81   : > { %993 = vrsqrt.f32 %v2143_v63  ;;  %v590_v51 = vmax.f32 %v586_v11, 1e-24  ;;  %v591_v58 = vmax.f32 %v587_v55, 1e-24  ;;  %v413_v29 = vmax.f32 %v409_v6, 1e-24 }
  0x82   : > { %995 = vrsqrt.f32 %v2144_v54  ;;  %v592_v59 = vmax.f32 %v588_v46, 1e-24  ;;  %v593_v30 = vmax.f32 %v589_v47, 1e-24  ;;  %v314_v37 = vmul.f32 %v1619_v50, %v2146_v9  ;;  %v2155_v39 = vld [vmem:[#allocation25_spill] sm:$0xff]  ;;  %v2157_v20 = vld [vmem:[#allocation26_spill] sm:$0xff] }
  0x83   : > { %997 = vrsqrt.f32 %v2145_v44  ;;  %v318_v19 = vmul.f32 %v1619_v50, %v2147_v24  ;;  %v315_v26 = vmul.f32 %v1786_v16, %v2148_v13  ;;  %v319_v52 = vmul.f32 %v1786_v16, %v2149_v48  ;;  %v2158_v63 = vld [vmem:[#allocation32_spill] sm:$0xff]  ;;  %v2159_v55 = vld [vmem:[#allocation37_spill] sm:$0xff]  ;;  %v2161_v44 = vld [vmem:[#allocation38_spill] sm:$0xff] }
  0x84   : > { %999 = vrsqrt.f32 %v590_v51  ;;  %v322_v12 = vmul.f32 %v1619_v50, %v2150_v5  ;;  %v323_v10 = vmul.f32 %v1786_v16, %v2151_v53  ;;  %v316_v7 = vmul.f32 %v1791_v23, %v2152_v57  ;;  %v2160_v47 = vld [vmem:[#allocation33_spill] sm:$0xff]  ;;  %v2165_v24 = vld [vmem:[#allocation36_spill] sm:$0xff]  ;;  %v2166_v48 = vld [vmem:[#allocation39_spill] sm:$0xff] }
  0x85   : > { %1001 = vrsqrt.f32 %v591_v58  ;;  %v317_v18 = vmul.f32 %v1793_v61, %v2153_v27  ;;  %v320_v35 = vmul.f32 %v1791_v23, %v2154_v33  ;;  %v324_v31 = vmul.f32 %v1791_v23, %v2155_v39  ;;  %v2162_v51 = vld [vmem:[#allocation41_spill] sm:$0xff]  ;;  %v2167_v57 = vld [vmem:[#allocation40_spill] sm:$0xff] }
  0x86   : > { %1003 = vrsqrt.f32 %v592_v59  ;;  %v321_v50 = vmul.f32 %v1793_v61, %v2156_v32  ;;  %v325_v16 = vmul.f32 %v1793_v61, %v2157_v20  ;;  %v366_v11 = vmul.f32 %v1801_v0, %v2158_v63  ;;  %v2163_v59 = vld [vmem:[#allocation42_spill] sm:$0xff]  ;;  %v2169_v63 = vld [vmem:[#allocation53_spill] sm:$0xff] }
  0x87   : > { %1005 = vrsqrt.f32 %v593_v30  ;;  %v370_v54 = vmul.f32 %v1801_v0, %v2159_v55  ;;  %v367_v6 = vmul.f32 %v1805_v42, %v2160_v47  ;;  %v371_v23 = vmul.f32 %v1805_v42, %v2161_v44 }
  0x88   : > { %1007 = vrsqrt.f32 %v413_v29  ;;  %v1893_v58 = vmul.f32 %v1801_v0, %v2162_v51  ;;  %v1897_v61 = vmul.f32 %v1805_v42, %v2163_v59  ;;  %v2164_v29 = vld [vmem:[#allocation34_spill] sm:$0xff]  ;;  %v372_v5 = vmul.f32 %v1807_v43, %v2166_v48 }
  0x89   : > { %v368_v9 = vmul.f32 %v1807_v43, %v2164_v29  ;;  %v1906_v53 = vmul.f32 %v1807_v43, %v1470_v17 }
  0x8d   : > { %v992_v28 = vpop.eup %991 }
  0x8e   : > { %v994_v21 = vpop.eup %993  ;;  %v369_v13 = vmul.f32 %v992_v28, %v2165_v24  ;;  %v373_v0 = vmul.f32 %v992_v28, %v2167_v57  ;;  %v1910_v27 = vmul.f32 %v992_v28, %v1474_v15  ;;  %v2168_v28 = vld [vmem:[#allocation52_spill] sm:$0xff] }
  0x8f   : > { %v996_v46 = vpop.eup %995  ;;  %v1913_v42 = vmul.f32 %v994_v21, %v1594_v38  ;;  %v1916_v33 = vmul.f32 %v994_v21, %v1609_v40  ;;  %v1925_v17 = vmul.f32 %v994_v21, %v1626_v3 }
  0x90   : > { %v998_v30 = vpop.eup %997  ;;  %v1919_v32 = vmul.f32 %v996_v46, %v1598_v34  ;;  %v1922_v20 = vmul.f32 %v996_v46, %v1613_v2  ;;  %v1928_v43 = vmul.f32 %v996_v46, %v1630_v8 }
  0x91   : > { %v1000_v39 = vpop.eup %999  ;;  %v420_v38 = vmul.f32 %v998_v30, %v2168_v28  ;;  %v1932_v55 = vmul.f32 %v998_v30, %v2169_v63 }
  0x92   : > { %v1002_v15 = vpop.eup %1001  ;;  %v598_v40 = vmul.f32 %v1000_v39, %v1795_v49  ;;  %v602_v34 = vmul.f32 %v1000_v39, %v1809_v22  ;;  %v1939_v3 = vmul.f32 %v1000_v39, %v1821_v60 }
  0x93   : > { %v1004_v47 = vpop.eup %1003  ;;  %v599_v2 = vmul.f32 %v1002_v15, %v1797_v25  ;;  %v603_v44 = vmul.f32 %v1002_v15, %v1811_v36  ;;  %v1942_v8 = vmul.f32 %v1002_v15, %v1823_v14 }
  0x94   : > { %v1006_v21 = vpop.eup %1005  ;;  %v600_v46 = vmul.f32 %v1004_v47, %v1799_v62  ;;  %v604_v51 = vmul.f32 %v1004_v47, %v1813_v56  ;;  %v1947_v49 = vmul.f32 %v1004_v47, %v1829_v41  ;;  %v614_v22 = vmul.f32 %v598_v40, %v314_v37 }
  0x95   : > { %v601_v59 = vmul.f32 %v1006_v21, %v1803_v45  ;;  %v605_v25 = vmul.f32 %v1006_v21, %v1815_v4  ;;  %v1952_v36 = vmul.f32 %v1006_v21, %v1831_v1  ;;  %v615_v60 = vmul.f32 %v599_v2, %v315_v26  ;;  %v1008_v57 = vpop.eup %1007 }
  0x96   : > { %v616_v29 = vmul.f32 %v600_v46, %v316_v7  ;;  %v618_v14 = vmul.f32 %v602_v34, %v318_v19  ;;  %v619_v24 = vmul.f32 %v603_v44, %v319_v52  ;;  %v620_v48 = vmul.f32 %v604_v51, %v320_v35  ;;  %v2170_v19 = vld [vmem:[#allocation14_spill] sm:$0xff]  ;;  %v2171_v35 = vld [vmem:[#allocation27_spill] sm:$0xff] }
  0x97   : > { %v617_v62 = vmul.f32 %v601_v59, %v317_v18  ;;  %v621_v39 = vmul.f32 %v605_v25, %v321_v50  ;;  %v626_v56 = vmul.f32 %v1939_v3, %v322_v12  ;;  %v627_v41 = vmul.f32 %v1942_v8, %v323_v10  ;;  %v2172_v18 = vld [vmem:[#allocation54_spill] sm:$0xff]  ;;  %v2173_v12 = vld [vmem:[#allocation15_spill] sm:$0xff] }
  0x98   : > { %v622_v37 = vadd.f32 %v618_v14, %v614_v22  ;;  %v623_v15 = vadd.f32 %v619_v24, %v615_v60  ;;  %v624_v45 = vadd.f32 %v620_v48, %v616_v29  ;;  %v628_v4 = vmul.f32 %v1947_v49, %v324_v31 }
  0x99   : > { %v625_v28 = vadd.f32 %v621_v39, %v617_v62  ;;  %v629_v1 = vmul.f32 %v1952_v36, %v325_v16  ;;  %v638_v26 = vmul.f32 %v598_v40, %v366_v11  ;;  %v639_v7 = vmul.f32 %v599_v2, %v367_v6 }
  0x9a   : > { %v421_v52 = vmul.f32 %v1008_v57, %v2170_v19  ;;  %v425_v63 = vmul.f32 %v1008_v57, %v2171_v35  ;;  %v428_v50 = vmul.f32 %v998_v30, %v2172_v18  ;;  %v640_v47 = vmul.f32 %v600_v46, %v368_v9 }
  0x9b   : > { %v429_v21 = vmul.f32 %v1008_v57, %v2173_v12  ;;  %v641_v10 = vmul.f32 %v601_v59, %v369_v13  ;;  %v642_v22 = vmul.f32 %v602_v34, %v370_v54  ;;  %v643_v60 = vmul.f32 %v603_v44, %v371_v23 }
  0x9c   : > { %v630_v29 = vadd.f32 %v626_v56, %v622_v37  ;;  %v631_v14 = vadd.f32 %v627_v41, %v623_v15  ;;  %v632_v31 = vadd.f32 %v628_v4, %v624_v45  ;;  %v644_v24 = vmul.f32 %v604_v51, %v372_v5 }
  0x9d   : > { %v633_v48 = vadd.f32 %v629_v1, %v625_v28  ;;  %v645_v16 = vmul.f32 %v605_v25, %v373_v0  ;;  %v646_v11 = vadd.f32 %v642_v22, %v638_v26  ;;  %v647_v6 = vadd.f32 %v643_v60, %v639_v7 }
  0x9e   : > { %v648_v62 = vadd.f32 %v644_v24, %v640_v47  ;;  %v650_v39 = vmul.f32 %v1939_v3, %v1893_v58  ;;  %v651_v30 = vmul.f32 %v1942_v8, %v1897_v61  ;;  %v652_v9 = vmul.f32 %v1947_v49, %v1906_v53 }
  0x9f   : > { %v649_v54 = vadd.f32 %v645_v16, %v641_v10  ;;  %v653_v23 = vmul.f32 %v1952_v36, %v1910_v27  ;;  %v666_v13 = vmul.f32 %v598_v40, %v1913_v42  ;;  %v667_v5 = vmul.f32 %v599_v2, %v1919_v32 }
  0xa0   : > { %v654_v0 = vadd.f32 %v650_v39, %v646_v11  ;;  %v655_v57 = vadd.f32 %v651_v30, %v647_v6  ;;  %v656_v56 = vadd.f32 %v652_v9, %v648_v62  ;;  %v668_v41 = vmul.f32 %v600_v46, %v420_v38 }
  0xa1   : > { %v657_v37 = vadd.f32 %v653_v23, %v649_v54  ;;  %v669_v58 = vmul.f32 %v601_v59, %v421_v52  ;;  %v670_v15 = vmul.f32 %v602_v34, %v1916_v33  ;;  %v671_v61 = vmul.f32 %v603_v44, %v1922_v20 }
  0xa2   : > { %v634_v45 = vand.u32 2147483647, %v630_v29  ;;  %v635_v53 = vand.u32 2147483647, %v631_v14  ;;  %v658_v4 = vand.u32 2147483647, %v654_v0  ;;  %v672_v28 = vmul.f32 %v604_v51, %v1932_v55 }
  0xa3   : > { %v659_v27 = vand.u32 2147483647, %v655_v57  ;;  %v673_v1 = vmul.f32 %v605_v25, %v425_v63  ;;  %v674_v42 = vadd.f32 %v670_v15, %v666_v13  ;;  %v675_v32 = vadd.f32 %v671_v61, %v667_v5 }
  0xa4   : > { %v636_v40 = vand.u32 2147483647, %v632_v31  ;;  %v637_v2 = vand.u32 2147483647, %v633_v48  ;;  %v660_v26 = vand.u32 2147483647, %v656_v56  ;;  %v676_v38 = vadd.f32 %v672_v28, %v668_v41 }
  0xa5   : > { %v661_v46 = vand.u32 2147483647, %v657_v37  ;;  %v677_v59 = vadd.f32 %v673_v1, %v669_v58  ;;  %v678_v33 = vmul.f32 %v1939_v3, %v1925_v17  ;;  %v679_v20 = vmul.f32 %v1942_v8, %v1928_v43 }
  0xa6   : > { %v680_v34 = vmul.f32 %v1947_v49, %v428_v50  ;;  %v681_v55 = vmul.f32 %v1952_v36, %v429_v21  ;;  %v662_v44 = vadd.f32 %v658_v4, %v634_v45  ;;  %v663_v51 = vadd.f32 %v659_v27, %v635_v53 }
  0xa7   : > { %v682_v25 = vadd.f32 %v678_v33, %v674_v42  ;;  %v683_v7 = vadd.f32 %v679_v20, %v675_v32  ;;  %v664_v19 = vadd.f32 %v660_v26, %v636_v40  ;;  %v665_v63 = vadd.f32 %v661_v46, %v637_v2 }
  0xa8   : > { %v684_v52 = vadd.f32 %v680_v34, %v676_v38  ;;  %v685_v35 = vadd.f32 %v681_v55, %v677_v59 }
  0xa9   : > { %v686_v18 = vand.u32 2147483647, %v682_v25  ;;  %v687_v47 = vand.u32 2147483647, %v683_v7 }
  0xaa   : > { %v688_v17 = vand.u32 2147483647, %v684_v52  ;;  %v689_v3 = vand.u32 2147483647, %v685_v35 }
  0xab   : > { %v690_v43 = vadd.f32 %v686_v18, %v662_v44  ;;  %v691_v8 = vadd.f32 %v687_v47, %v663_v51 }
  0xac   : > { %v692_v49 = vadd.f32 %v688_v17, %v664_v19  ;;  %v693_v36 = vadd.f32 %v689_v3, %v665_v63 }
  0xad   : > { %v709_v50 = vadd.f32 %v691_v8, %v690_v43 }
  0xaf   : > { %v710_v12 = vadd.f32 %v709_v50, %v692_v49 }
  0xb1   : > { %v711_v21 = vadd.f32 %v710_v12, %v693_v36 }
  0xb3   : > { %712 = vst [vmem:[%s174_s22] sm:$0xff] %v711_v21 }
  0xb4   : > { %1022 = shalt.err (!%p1019_p8)
}
  0xb5   : > { %s1023_s15 = scalar_lea.hbm %s725_s3, 128  ;;  %s1027_s24 = scalar_lea.hbm %s2023_s1, 256 }
  0xb6   : > { %p1024_p10 = scmp.ne.s32.totalorder %s725_s3, %s1023_s15  ;;  %p1028_p1 = scmp.lt.s32.totalorder %s725_s3, %s2023_s1 }
  0xb7   : > { %p1029_p2 = scmp.lt.s32.totalorder %s1027_s24, %s1023_s15 }
  0xb8   : > { %p1025_p13 = pnand %p1024_p10, %p1159_p9 }
  0xb9   : > { %p1030_p3 = por %p1029_p2, %p1028_p1 }
  0xba   : > { %p1026_p0 = pneg %p1025_p13 }
  0xbc   : > { %p1031_p12 = pnand %p1030_p3, %p1026_p0 }
  0xbe   : > { %1034 = shalt.err (!%p1031_p12)
}
  0xbf   : > { %900 = dma.vmem_to_hbm [thread:$0]  (%p1159_p9), %s728_s29, 128, %s725_s3, %s714_s4  }
  0xc0 PF: > { %s739_s27 = sand.u32 1, %s1069_s6   ;;  %p2174_p4 = scmp.ge.s32.totalorder %s1089_s11, 2 }
  0xc1   : > { %s740_s28 = scalar_lea.sflag [#allocation5], %s739_s27 }
  0xc2   : > { %p903_p5 = pnand %p2174_p4, %p1166_p11 }
  0xc4   : > { %p904_p6 = pneg %p903_p5 }
  0xc6   : > { %1064 = dma.done.wait (%p904_p6), %s740_s28, 128  }
  0xc7   : > { %1066 = vsyncadd (%p904_p6), %s740_s28, 4294967168  ;;  %s17_s11 = sadd.s32 1, %s1089_s11   ;;  %s2175_s6 = smov %s1073_s7 }
  0xc8   : > { %p14_p7 = scmp.ge.s32.totalorder %s17_s11, 4   ;;  %s2176_s7 = smov %s1077_s8 }
  0xc9   : > { %s2177_s8 = smov %s1164_s20  ;;  %s2178_s9 = smov %s1085_s10 }
  0xca   : > { %s2179_s10 = smov %s2181_s14  ;;  %16 = sbr.rel (!%p14_p7) target bundleno = 6 (0x6), region = 99 }
  0xcf   :  { %745 = vsyncpa [#allocation4], 1 }
  0xd0   :  { %747 = vsyncpa [#allocation4 + $0x1], 1 }
  0xd1   :  { %748 = vsyncpa [#allocation5], 1 }
  0xd2   :  { %750 = vsyncpa [#allocation5 + $0x1], 1 }

</bundles_post_ra>
